<compile_context>
chip_gen: v7x
topology: tpu7x:2x2x1
jax: 0.10.0
libtpu: 0.0.40
codegen_flags: <defaults>
</compile_context>

<pallas_src>
import math

import jax
import jax.numpy as jnp
from jax import lax
from jax.experimental import pallas as pl
from jax.experimental.pallas import tpu as pltpu


def _round_up(x, m):
    return ((x + m - 1) // m) * m


def weightnorm_linear_kernel(scale_ref, x_ref, v_ref, b_ref, o_ref, acc_ref):
    # scale_ref: (1, 1) f32 in SMEM (g / ||v||_F, precomputed once in the wrapper).
    # x_ref: (TM, TK), v_ref: (TN, TK), b_ref: (1, TN), o_ref: (TM, TN).
    # acc_ref: (TM, TN) f32 VMEM scratch, resident across the K grid axis.
    k = pl.program_id(2)

    @pl.when(k == 0)
    def _():
        acc_ref[...] = jnp.zeros_like(acc_ref)

    # Contract on D_in of both operands (no transpose, no scaled-weight copy) -> MXU,
    # accumulating in f32 regardless of the matmul input dtype.
    acc_ref[...] += lax.dot_general(
        x_ref[...], v_ref[...],
        dimension_numbers=(((1,), (1,)), ((), ())),
        preferred_element_type=jnp.float32)

    @pl.when(k == pl.num_programs(2) - 1)
    def _():
        # Fold the weight-norm scale + bias + cast into the small output tile.
        o_ref[...] = (acc_ref[...] * scale_ref[0, 0] + b_ref[...]).astype(o_ref.dtype)


def weightnorm_linear(x2d, g, v, b, *, tile_m=256, tile_n=256, tile_k=512,
                      compute_dtype=None):
    """y = x @ (v * g / ||v||_F).T + b   (PyTorch WeightNorm(Linear) forward).

    x2d: (N, D_in), g: scalar, v: (D_out, D_in), b: (D_out,).
    compute_dtype: optionally jnp.bfloat16 for the matmul inputs (recommended on
    v5e/v6e/v7x); accumulation stays f32, the scale/bias epilogue stays f32 on the VPU.
    """
    N, D_in = x2d.shape
    D_out = v.shape[0]
    out_dtype = x2d.dtype

    # Hoisted: whole-tensor Frobenius norm + scale computed exactly once per call.
    # (For static / inference weights this can be cached by the caller.)
    scale = (g.astype(jnp.float32)
             / jnp.sqrt(jnp.sum(v.astype(jnp.float32) ** 2))).reshape(1, 1)

    if compute_dtype is not None:
        x_mm = x2d.astype(compute_dtype)
        v_mm = v.astype(compute_dtype)
    else:
        x_mm, v_mm = x2d, v

    # Clamp tiles to the problem so tiny layers use full-dim blocks (always legal)
    # and big layers use MXU-filling 256/512 tiles with ragged last blocks masked
    # by Pallas (no wrapper-side padding of M / D_out).
    tile_m = tile_m if N > tile_m else N
    tile_n = tile_n if D_out > tile_n else D_out

    if D_in <= tile_k:
        tile_k = D_in                      # single K block == full D_in (legal as-is)
    else:
        tile_k = _round_up(tile_k, 128)    # lane-aligned K tiles
        rem = D_in % tile_k
        if rem:
            # Only the contraction axis must be exact: zero-pad K (zeros are exact
            # for both the matmul and the norm, which was computed on the original v).
            pad = tile_k - rem
            x_mm = jnp.pad(x_mm, ((0, 0), (0, pad)))
            v_mm = jnp.pad(v_mm, ((0, 0), (0, pad)))
    d_in_p = x_mm.shape[1]

    grid = (pl.cdiv(N, tile_m), pl.cdiv(D_out, tile_n), d_in_p // tile_k)

    b2d = b.astype(jnp.float32).reshape(1, D_out)

    in_bytes = jnp.dtype(x_mm.dtype).itemsize
    cost = pl.CostEstimate(
        flops=2 * N * D_out * D_in,
        transcendentals=0,
        bytes_accessed=(N * D_in + D_out * D_in) * in_bytes
                       + N * D_out * jnp.dtype(out_dtype).itemsize)

    out = pl.pallas_call(
        weightnorm_linear_kernel,
        out_shape=jax.ShapeDtypeStruct((N, D_out), out_dtype),
        grid_spec=pltpu.PrefetchScalarGridSpec(
            num_scalar_prefetch=0,
            grid=grid,
            in_specs=[
                # scalar scale lives in SMEM (whole (1,1) array, no tiling)
                pl.BlockSpec(memory_space=pltpu.MemorySpace.SMEM),
                # activation rows tiled over (M, K)
                pl.BlockSpec((tile_m, tile_k), lambda i, j, k: (i, k)),
                # weight rows tiled over (D_out, K) -> bounded VMEM footprint
                pl.BlockSpec((tile_n, tile_k), lambda i, j, k: (j, k)),
                # bias slice for this D_out tile (read only in the epilogue)
                pl.BlockSpec((1, tile_n), lambda i, j, k: (0, j)),
            ],
            out_specs=pl.BlockSpec((tile_m, tile_n), lambda i, j, k: (i, j)),
            scratch_shapes=[pltpu.VMEM((tile_m, tile_n), jnp.float32)],
        ),
        compiler_params=pltpu.CompilerParams(
            # M / D_out independent -> megacore sharding; K is a reduction.
            dimension_semantics=("parallel", "parallel", "arbitrary"),
            # No vmem_limit override: with K-tiling the working set is a few MiB,
            # well inside default scoped VMEM on v5e/v6e and v7x's 64 MiB physical.
        ),
        cost_estimate=cost,
    )(scale, x_mm, v_mm, b2d)

    return out


def init_weightnorm_linear(key, d_in, d_out):
    """Deterministic init mimicking torch.nn.Linear + WeightNorm._reset()."""
    kw, kb = jax.random.split(key)
    bound = 1.0 / math.sqrt(d_in)
    w = jax.random.uniform(kw, (d_out, d_in), jnp.float32, -bound, bound)
    b = jax.random.uniform(kb, (d_out,), jnp.float32, -bound, bound)
    g = jnp.sqrt(jnp.sum(w * w))   # torch.norm(w)  (whole-tensor Frobenius)
    v = w / g                      # w / g.expand_as(w)
    return g, v, b


if __name__ == "__main__":
    batch, seq, hidden, out_dim = 2, 8, 32, 32

    key = jax.random.PRNGKey(0)
    k_x, k_p = jax.random.split(key)
    x = jax.random.normal(k_x, (batch, seq, hidden), jnp.float32)
    g, v, b = init_weightnorm_linear(k_p, hidden, out_dim)

    x2d = x.reshape(batch * seq, hidden)
    # f32 matmul in the demo so the reference check stays tight; pass
    # compute_dtype=jnp.bfloat16 (and loosen the tolerance) for peak MXU throughput.
    y2d = weightnorm_linear(x2d, g, v, b)
    y = y2d.reshape(batch, seq, out_dim)
    jax.block_until_ready(y)

    # pure-JAX reference of the exact PyTorch forward
    w_ref = v * (g / jnp.sqrt(jnp.sum(v * v)))
    y_ref = x2d @ w_ref.T + b
    assert jnp.allclose(y2d, y_ref, atol=1e-5, rtol=1e-5), "mismatch vs reference"

    print("KERNEL_OK")
</pallas_src>

<mosaic_0001>
module attributes {stable_mosaic.version = 11 : i64} {
  func.func @weightnorm_linear_kernel(%arg0: i32, %arg1: i32, %arg2: i32, %arg3: memref<1x1xf32, #tpu.memory_space<smem>>, %arg4: memref<16x32xf32, #tpu.memory_space<vmem>>, %arg5: memref<32x32xf32, #tpu.memory_space<vmem>>, %arg6: memref<1x32xf32, #tpu.memory_space<vmem>>, %arg7: memref<16x32xf32, #tpu.memory_space<vmem>>, %arg8: memref<16x32xf32, #tpu.memory_space<vmem>>) attributes {dimension_semantics = [#tpu.dimension_semantics<parallel>, #tpu.dimension_semantics<parallel>, #tpu.dimension_semantics<arbitrary>], iteration_bounds = array<i64: 1, 1, 1>, scalar_prefetch = 0 : i64, scratch_operands = 1 : i64, tpu.core_type = #tpu.core_type<tc>, window_params = [{transform_indices = @transform_0, window_bounds = array<i64: 1, 1>}, {transform_indices = @transform_1, window_bounds = array<i64: 16, 32>}, {transform_indices = @transform_2, window_bounds = array<i64: 32, 32>}, {transform_indices = @transform_3, window_bounds = array<i64: 1, 32>}, {transform_indices = @transform_4, window_bounds = array<i64: 16, 32>}]} {
    %c0_i32 = arith.constant 0 : i32
    %0 = arith.cmpi eq, %arg2, %c0_i32 : i32
    %1 = arith.extui %0 : i1 to i32
    %c0_i32_0 = arith.constant 0 : i32
    %2 = arith.cmpi ne, %1, %c0_i32_0 : i32
    scf.if %2 {
      %cst_10 = arith.constant 0.000000e+00 : f32
      %12 = vector.broadcast %cst_10 : f32 to vector<16x32xf32>
      %c0_11 = arith.constant 0 : index
      %c0_12 = arith.constant 0 : index
      %13 = vector.load %arg8[%c0_11, %c0_12] : memref<16x32xf32, #tpu.memory_space<vmem>>, vector<16x32xf32>
      tpu.vector_store %arg8[%c0_11, %c0_12], %12 {strides = array<i32>} : memref<16x32xf32, #tpu.memory_space<vmem>>, vector<16x32xf32>,
    } else {
    }
    %c0 = arith.constant 0 : index
    %c0_1 = arith.constant 0 : index
    %3 = vector.load %arg8[%c0, %c0_1] : memref<16x32xf32, #tpu.memory_space<vmem>>, vector<16x32xf32>
    %c0_2 = arith.constant 0 : index
    %c0_3 = arith.constant 0 : index
    %4 = vector.load %arg4[%c0_2, %c0_3] : memref<16x32xf32, #tpu.memory_space<vmem>>, vector<16x32xf32>
    %c0_4 = arith.constant 0 : index
    %c0_5 = arith.constant 0 : index
    %5 = vector.load %arg5[%c0_4, %c0_5] : memref<32x32xf32, #tpu.memory_space<vmem>>, vector<32x32xf32>
    %cst = arith.constant dense<0.000000e+00> : vector<16x32xf32>
    %6 = tpu.matmul %4, %5, %cst {dimension_numbers = #tpu.dot_dimension_numbers<[1], [1], [0], [0], [0, 0, 1, 0], [], []>} : vector<16x32xf32>, vector<32x32xf32>, vector<16x32xf32> -> vector<16x32xf32>
    %7 = arith.addf %3, %6 : vector<16x32xf32>
    %c0_6 = arith.constant 0 : index
    %c0_7 = arith.constant 0 : index
    %8 = vector.load %arg8[%c0_6, %c0_7] : memref<16x32xf32, #tpu.memory_space<vmem>>, vector<16x32xf32>
    tpu.vector_store %arg8[%c0_6, %c0_7], %7 {strides = array<i32>} : memref<16x32xf32, #tpu.memory_space<vmem>>, vector<16x32xf32>,
    %c0_i32_8 = arith.constant 0 : i32
    %9 = arith.cmpi eq, %arg2, %c0_i32_8 : i32
    %10 = arith.extui %9 : i1 to i32
    %c0_i32_9 = arith.constant 0 : i32
    %11 = arith.cmpi ne, %10, %c0_i32_9 : i32
    scf.if %11 {
      %c0_10 = arith.constant 0 : index
      %c0_11 = arith.constant 0 : index
      %12 = vector.load %arg8[%c0_10, %c0_11] : memref<16x32xf32, #tpu.memory_space<vmem>>, vector<16x32xf32>
      %c0_12 = arith.constant 0 : index
      %c0_13 = arith.constant 0 : index
      %13 = memref.load %arg3[%c0_12, %c0_13] : memref<1x1xf32, #tpu.memory_space<smem>>
      %14 = vector.broadcast %13 : f32 to vector<16x32xf32>
      %15 = arith.mulf %12, %14 : vector<16x32xf32>
      %c0_14 = arith.constant 0 : index
      %c0_15 = arith.constant 0 : index
      %16 = vector.load %arg6[%c0_14, %c0_15] : memref<1x32xf32, #tpu.memory_space<vmem>>, vector<1x32xf32>
      %17 = vector.broadcast %16 : vector<1x32xf32> to vector<16x32xf32>
      %18 = arith.addf %15, %17 : vector<16x32xf32>
      %c0_16 = arith.constant 0 : index
      %c0_17 = arith.constant 0 : index
      %19 = vector.load %arg7[%c0_16, %c0_17] : memref<16x32xf32, #tpu.memory_space<vmem>>, vector<16x32xf32>
      tpu.vector_store %arg7[%c0_16, %c0_17], %18 {strides = array<i32>} : memref<16x32xf32, #tpu.memory_space<vmem>>, vector<16x32xf32>,
    } else {
    }
    return
  }
  func.func @transform_0(%arg0: i32, %arg1: i32, %arg2: i32) -> (i32, i32) {
    %c0_i32 = arith.constant 0 : i32
    %c0_i32_0 = arith.constant 0 : i32
    %c0_i32_1 = arith.constant 0 : i32
    return %c0_i32, %c0_i32_0 : i32, i32
  }
  func.func @transform_1(%arg0: i32, %arg1: i32, %arg2: i32) -> (i32, i32) {
    %c0_i32 = arith.constant 0 : i32
    return %arg0, %arg2 : i32, i32
  }
  func.func @transform_2(%arg0: i32, %arg1: i32, %arg2: i32) -> (i32, i32) {
    %c0_i32 = arith.constant 0 : i32
    return %arg1, %arg2 : i32, i32
  }
  func.func @transform_3(%arg0: i32, %arg1: i32, %arg2: i32) -> (i32, i32) {
    %c0_i32 = arith.constant 0 : i32
    %c0_i32_0 = arith.constant 0 : i32
    return %c0_i32, %arg1 : i32, i32
  }
  func.func @transform_4(%arg0: i32, %arg1: i32, %arg2: i32) -> (i32, i32) {
    %c0_i32 = arith.constant 0 : i32
    return %arg0, %arg1 : i32, i32
  }
}

</mosaic_0001>

<bundles_post_ra>
// kernel: tpu_custom_call.1
= control target key start
LH: loop header
LB: loop body
LE: loop exit
PB: predicated region body
PF: predicated region fallthrough
CT: control target
= control target key end

     0   :  { %10 = vsyncpa [#allocation5], 0  ;;  %s404_s0 = inlined_call_operand.<no memory space> [shape: f32[1,1], index: 0, kind: input, shape index: {}]   ;;  %s405_s1 = inlined_call_operand.hbm [shape: f32[16,32], index: 1, kind: input, shape index: {}]   ;;  %s406_s2 = inlined_call_operand.hbm [shape: f32[32,32], index: 2, kind: input, shape index: {}]   ;;  %s407_s3 = inlined_call_operand.vmem [shape: f32[1,32], index: 3, kind: input, shape index: {}]   ;;  %s408_s4 = inlined_call_operand.hbm [shape: f32[16,32], index: 4, kind: output, shape index: {}]  }
   0x1   :  { %11 = vsyncpa [#allocation8], 0 }
   0x2   :  { %12 = vsyncpa [#allocation6], 0  ;;  %s312_s15 = smov [#allocation4]   ;;  %s240_s19 = scalar_lea.hbm %s405_s1, 256 }
   0x3   :  { %s20_s16 = sshll.u32 %s312_s15, 4  ;;  %p241_p0 = scmp.ne.s32.totalorder %s405_s1, %s240_s19  ;;  %s21_s16 = int_to_ptr.vmem [resolvable:$true] %s20_s16 }
   0x4   :  { %p244_p1 = scmp.lt.u32.totalorder %s240_s19, %s405_s1 }
   0x6   :  { %p246_p2 = pnand %p244_p1, %p241_p0 }
   0x8   :  { %249 = shalt.err (!%p246_p2)
}
   0x9   :  { %s250_s24 = scalar_lea.vmem %s21_s16, 256  ;;  %p255_p4 = scmp.lt.s32.totalorder %s21_s16, %s21_s16 }
   0xa   :  { %p251_p3 = scmp.ne.s32.totalorder %s21_s16, %s250_s24  ;;  %p256_p5 = scmp.lt.s32.totalorder %s250_s24, %s250_s24 }
   0xc   :  { %p257_p6 = por %p256_p5, %p255_p4 }
   0xe   :  { %p258_p7 = pnand %p257_p6, %p251_p3 }
  0x10   :  { %261 = shalt.err (!%p258_p7)
}
  0x11   :  { %s313_s25 = smov 128   ;;  %s314_s26 = smov 8  }
  0x12   :  { %26 = dma.hbm_to_vmem [thread:$0]  %s405_s1, 256, %s21_s16, [#allocation5], %s313_s25, %s313_s25, %s314_s26  }
  0x13   :  { %s315_s29 = smov [#allocation7]   ;;  %s262_s7 = scalar_lea.hbm %s406_s2, 512 }
  0x14   :  { %s32_s30 = sshll.u32 %s315_s29, 4  ;;  %p263_p8 = scmp.ne.s32.totalorder %s406_s2, %s262_s7  ;;  %s33_s30 = int_to_ptr.vmem [resolvable:$true] %s32_s30 }
  0x15   :  { %p266_p9 = scmp.lt.u32.totalorder %s262_s7, %s406_s2 }
  0x17   :  { %p268_p10 = pnand %p266_p9, %p263_p8 }
  0x19   :  { %271 = shalt.err (!%p268_p10)
}
  0x1a   :  { %s272_s12 = scalar_lea.vmem %s33_s30, 512  ;;  %p277_p12 = scmp.lt.s32.totalorder %s33_s30, %s33_s30 }
  0x1b   :  { %p273_p11 = scmp.ne.s32.totalorder %s33_s30, %s272_s12  ;;  %p278_p13 = scmp.lt.s32.totalorder %s272_s12, %s272_s12 }
  0x1d   :  { %p279_p0 = por %p278_p13, %p277_p12 }
  0x1f   :  { %p280_p1 = pnand %p279_p0, %p273_p11 }
  0x21   :  { %283 = shalt.err (!%p280_p1)
}
  0x22   :  { %38 = dma.hbm_to_vmem [thread:$0]  %s406_s2, 512, %s33_s30, [#allocation8], %s313_s25, %s313_s25, %s314_s26  }
  0x23   :  { %306 = dma.done.wait [#allocation5], 256  }
  0x24   :  { %307 = vsyncadd [#allocation5], 4294967040 }
  0x25   :  { %308 = dma.done.wait [#allocation8], 512  }
  0x26   :  { %309 = vsyncadd [#allocation8], 4294966784  ;;  %vm51_vm0 = vcmask 261120   ;;  %v316_v0 = vmov 0.0   ;;  %v58_v1 = vld [vmem:[#allocation7] sm:$0xff]  ;;  %v59_v2 = vld [vmem:[#allocation7 + $0x8] sm:$0xff]  ;;  %v166_v15 = vstv %s404_s0 }
  0x27   :  { %53 = vst.msk [vmem:[#allocation2 + $0x8] sm:$0xff] %vm51_vm0, %v316_v0  ;;  %52 = vst.msk [vmem:[#allocation2] sm:$0xff] %vm51_vm0, %v316_v0  ;;  %v60_v3 = vld [vmem:[#allocation7 + $0x10] sm:$0xff]  ;;  %v222_v4 = vpack.c.bf16 %v59_v2, %v58_v1  ;;  %v61_v5 = vld [vmem:[#allocation7 + $0x18] sm:$0xff]  ;;  %s317_s17 = smov [#allocation9]  }
  0x28   :  { %vm223_vm1 = vmpackc.low %vm51_vm0, %vm51_vm0  ;;  %v56_v6 = vld [vmem:[#allocation4] sm:$0xff]  ;;  %v228_v7 = vpack.c.bf16 %v61_v5, %v60_v3  ;;  %v57_v8 = vld [vmem:[#allocation4 + $0x8] sm:$0xff]  ;;  %s185_s18 = sshll.u32 %s317_s17, 4  ;;  %s186_s18 = int_to_ptr.vmem [resolvable:$true] %s185_s18 }
  0x29   :  { %219 = vmatprep.mubr.msk.f32.mxu0 %vm51_vm0, %v56_v6  ;;  %224 = vmatprep.subr.msk.bf16.mxu0 %vm223_vm1, %v222_v4  ;;  %v204_v17 = vld [vmem:[%s407_s3] ss:$0 sm:$0xff]  ;;  %s284_s19 = scalar_lea.vmem %s186_s18, 256  ;;  %p289_p3 = scmp.lt.s32.totalorder %s186_s18, %s186_s18 }
  0x2a   :  { %227 = vmatpush3.bf16.xpose.msk.msra.mxu0 %vm223_vm1, %v222_v4  ;;  %p285_p2 = scmp.ne.s32.totalorder %s186_s18, %s284_s19  ;;  %p290_p4 = scmp.lt.s32.totalorder %s284_s19, %s284_s19 }
  0x2b   :  { %230 = vmatprep.subr.msk.bf16.mxu0 %vm223_vm1, %v228_v7 }
  0x2c   :  { %p291_p5 = por %p290_p4, %p289_p3 }
  0x2e   :  { %v55_v9 = vld [vmem:[#allocation2 + $0x8] sm:$0xff]  ;;  %v54_v10 = vld [vmem:[#allocation2] sm:$0xff]  ;;  %p292_p6 = pnand %p291_p5, %p285_p2 }
  0x32   :  { %233 = vmatpush3.bf16.xpose.msk.msra.mxu0 %vm223_vm1, %v228_v7 }
  0x39   :  { %220 = vmatmul.mubr.msk.f32.vlgmr.msra.gmra.mrb[0].mxu0 %vm51_vm0, %v57_v8 }
 0x10c   :  { %v221_v11 = vpop.f32.mrb[0].mxu0 }
 0x10d   :  { %v157_v12 = vadd.f32 %v221_v11, %v55_v9  ;;  %v147_v13 = vpop.f32.mrb[1].mxu0 }
 0x10e   :  { %v156_v14 = vadd.f32 %v147_v13, %v54_v10 }
 0x10f   :  { %159 = vst.msk [vmem:[#allocation2 + $0x8] sm:$0xff] %vm51_vm0, %v157_v12 }
 0x110   :  { %158 = vst.msk [vmem:[#allocation2] sm:$0xff] %vm51_vm0, %v156_v14 }
 0x116   :  { %v164_v16 = vld [vmem:[#allocation2 + $0x8] sm:$0xff] }
 0x117   :  { %v163_v18 = vld [vmem:[#allocation2] sm:$0xff]  ;;  %v168_v19 = vmul.f32 %v166_v15, %v164_v16 }
 0x118   :  { %v167_v20 = vmul.f32 %v166_v15, %v163_v18 }
 0x119   :  { %v177_v21 = vadd.f32 %v204_v17, %v168_v19 }
 0x11a   :  { %v176_v22 = vadd.f32 %v204_v17, %v167_v20 }
 0x11b   :  { %179 = vst.msk [vmem:[#allocation9 + $0x8] sm:$0xff] %vm51_vm0, %v177_v21 }
 0x11c   :  { %178 = vst.msk [vmem:[#allocation9] sm:$0xff] %vm51_vm0, %v176_v22 }
 0x11d   :  { %295 = shalt.err (!%p292_p6)
}
 0x11e   :  { %s296_s20 = scalar_lea.hbm %s408_s4, 256 }
 0x11f   :  { %p297_p7 = scmp.ne.s32.totalorder %s408_s4, %s296_s20  ;;  %p300_p8 = scmp.lt.u32.totalorder %s296_s20, %s408_s4 }
 0x121   :  { %p302_p9 = pnand %p300_p8, %p297_p7 }
 0x123   :  { %305 = shalt.err (!%p302_p9)
}
 0x124   :  { %191 = dma.vmem_to_hbm [thread:$0]  %s186_s18, 256, %s408_s4, [#allocation6], %s313_s25, %s313_s25, %s314_s26  }
 0x125   :  { %310 = dma.done.wait [#allocation6], 256  }
 0x126   :  { %311 = vsyncadd [#allocation6], 4294967040 }
 0x127   :  { %195 = vsyncpa [#allocation5], 1 }
 0x128   :  { %196 = vsyncpa [#allocation8], 1 }
 0x129   :  { %197 = vsyncpa [#allocation6], 1 }

</bundles_post_ra>
